<compile_context>
chip_gen: v7x
topology: tpu7x:2x2x1
jax: 0.10.0
libtpu: 0.0.40
codegen_flags: <defaults>
</compile_context>

<pallas_src>
import functools

import numpy as np
import jax
import jax.numpy as jnp
from jax.experimental import pallas as pl
from jax.experimental.pallas import tpu as pltpu


def _silu(v):
    return v * jax.nn.sigmoid(v)


def _round_up(n, m):
    return ((n + m - 1) // m) * m


# --------------------------------- kernel -----------------------------------
def _mbconv_kernel(x_ref, w_exp_ref, w_dw_ref, mask_ref, w_ser_ref, w_see_ref,
                   w_proj_ref, bias_ref, o_ref, *, K, H, W, Bb, has_shortcut):
    """Bb images per grid step, folded onto the lane axis: (C, Bb*H*W)."""
    HW = H * W
    N = Bb * HW
    P = (K - 1) // 2
    f32 = jnp.float32

    x = x_ref[...].astype(f32)          # (Cin_p, N), lane-dense
    w_exp = w_exp_ref[...]              # (Cexp_p, Cin_p)   BN1 scale folded in
    w_dw = w_dw_ref[...]                # (K*K, Cexp_p, 1)  BN2 scale folded in
    dw_mask = mask_ref[...]             # (K*K, 1, N) 0/1 boundary masks, per-image tiled
    w_ser = w_ser_ref[...]              # (Csq_p, Cexp_p)
    w_see = w_see_ref[...]              # (Cexp_p, Csq_p)
    w_proj = w_proj_ref[...]            # (Cout_p, Cexp_p)  BN3 scale folded in
    bias = bias_ref[...]                # packed (3*Cexp_p + Csq_p + Cout_p, 1)

    Cexp = w_exp.shape[0]
    Csq = w_ser.shape[0]
    Cout = w_proj.shape[0]
    b1 = bias[0:Cexp]                                   # expand (folded BN1 shift)
    b2 = bias[Cexp:2 * Cexp]                            # depthwise (folded BN2 shift)
    b_see = bias[2 * Cexp:3 * Cexp]                     # SE expand bias
    b_ser = bias[3 * Cexp:3 * Cexp + Csq]               # SE reduce bias
    b3 = bias[3 * Cexp + Csq:3 * Cexp + Csq + Cout]     # project (folded BN3 shift)

    # ---- expand: ONE (Cexp, Cin) @ (Cin, Bb*HW) matmul (+ folded BN1) + SiLU ----
    t = jnp.dot(w_exp, x, preferred_element_type=f32) + b1
    t = _silu(t)

    # ---- depthwise KxK, stride 1, zero pad P: lane rolls + boundary masks ----
    ctr = P * K + P                                     # center tap: no shift, no mask
    acc = t * w_dw[ctr]
    for dh in range(K):
        for dw in range(K):
            tap = dh * K + dw
            if tap == ctr:
                continue
            d = (dh - P) * W + (dw - P)                 # flat spatial offset
            shifted = pltpu.roll(t, (-d) % N, axis=1)   # XLU; mask kills wrap/bleed
            acc = acc + (shifted * dw_mask[tap]) * w_dw[tap]
    acc = _silu(acc + b2)                               # folded BN2 bias

    # ---- squeeze-excite: per-image pool (256-lane aligned slices) + matvecs ----
    gated = []
    for b in range(Bb):
        sl = acc[:, b * HW:(b + 1) * HW]                              # (Cexp, HW)
        pool = jnp.mean(sl, axis=1, keepdims=True)                    # (Cexp, 1)
        s1 = _silu(jnp.dot(w_ser, pool, preferred_element_type=f32) + b_ser)
        g = jax.nn.sigmoid(jnp.dot(w_see, s1, preferred_element_type=f32) + b_see)
        gated.append(sl * g)                            # gate column broadcast over lanes
    acc = jnp.concatenate(gated, axis=1)

    # ---- project: ONE (Cout, Cexp) @ (Cexp, Bb*HW) matmul (+ folded BN3) ----
    out = jnp.dot(w_proj, acc, preferred_element_type=f32) + b3
    if has_shortcut:
        out = out + x                                   # DropPath is identity in eval mode
    o_ref[...] = out.astype(o_ref.dtype)                # dense (Cout_p, Bb*HW) store


# ------------------------------- host wrapper --------------------------------
def _pick_bb(B, HW, Cin_p, Cexp_p, Cout_p, K):
    """Images folded onto lanes per grid step.
    v7x (2 TensorCores): keep >= 4 grid steps (>= 2 per core so the i+1 block
    DMA hides under compute).  Single-TC v5e/v6e: fewer, larger steps (>= 2 for
    pipelining) since per-step overhead dominates at these block sizes.
    bb is also bounded by a conservative VMEM budget."""
    kind = ""
    try:
        kind = jax.devices()[0].device_kind.lower()
    except Exception:
        pass
    min_steps = 4 if "v7" in kind else 2
    vmem_budget = 24 << 20  # stay well under the 32 MiB scoped default (v7x: 64 MiB total)

    def fits(cand):
        n = cand * HW
        # 2x double-buffered in/out blocks + mask + ~4 live (Cexp_p, n) f32 temps.
        return 4 * n * (2 * Cin_p + 2 * Cout_p + K * K + 4 * Cexp_p) <= vmem_budget

    for cand in (16, 8, 4, 2):
        if B % cand == 0 and B // cand >= min_steps and fits(cand):
            return cand
    return 1


def mbconv_pallas(x_nchw, kp, *, kernel_size, stride, has_shortcut, out_channels):
    # TODO(synk): stride=2 depthwise-conv path not implemented in this kernel.
    assert stride == 1
    B, Cin, H, W = x_nchw.shape
    K = kernel_size
    HW = H * W
    Cexp_p, Cin_p = kp["w_exp"].shape
    Cout_p = kp["w_proj"].shape[0]
    Csq_p = kp["w_ser"].shape[0]

    # NCHW -> channels-major with the batch folded onto the lane axis:
    # (Cin_p, B*HW).  Channels zero-padded to sublane multiples of 8 (exact).
    x = x_nchw.reshape(B, Cin, HW).transpose(1, 0, 2).reshape(Cin, B * HW)
    if Cin_p != Cin:
        x = jnp.pad(x, ((0, Cin_p - Cin), (0, 0)))

    bb = _pick_bb(B, HW, Cin_p, Cexp_p, Cout_p, K)
    grid = (B // bb,)
    N = bb * HW

    # Boundary masks tiled per image inside the block so pltpu.roll never
    # bleeds pixels across image boundaries on the shared lane axis.
    dw_mask = jnp.tile(kp["dw_mask"], (1, 1, bb))

    def full_spec(a):
        return pl.BlockSpec(a.shape, lambda i, n=a.ndim: (0,) * n)

    weight_bytes = 4 * sum(int(np.prod(v.shape)) for v in kp.values())
    cost = pl.CostEstimate(
        flops=int(2 * B * HW * (Cin_p * Cexp_p + Cexp_p * K * K + Cexp_p * Cout_p)
                  + 4 * B * Csq_p * Cexp_p + B * HW * Cexp_p),
        transcendentals=int(2 * B * HW * Cexp_p + B * (2 * Cexp_p + Csq_p)),
        bytes_accessed=int(4 * (x.size + B * Cout_p * HW + bb * HW * K * K)
                           + weight_bytes),
    )

    kernel = functools.partial(_mbconv_kernel, K=K, H=H, W=W, Bb=bb,
                               has_shortcut=has_shortcut)
    out_flat = pl.pallas_call(
        kernel,
        out_shape=jax.ShapeDtypeStruct((Cout_p, B * HW), x_nchw.dtype),
        grid=grid,
        in_specs=[
            pl.BlockSpec((Cin_p, N), lambda i: (0, i)),
            full_spec(kp["w_exp"]), full_spec(kp["w_dw"]), full_spec(dw_mask),
            full_spec(kp["w_ser"]), full_spec(kp["w_see"]),
            full_spec(kp["w_proj"]), full_spec(kp["bias"]),
        ],
        out_specs=pl.BlockSpec((Cout_p, N), lambda i: (0, i)),
        compiler_params=pltpu.CompilerParams(dimension_semantics=("parallel",)),
        cost_estimate=cost,
    )(x, kp["w_exp"], kp["w_dw"], dw_mask, kp["w_ser"], kp["w_see"],
      kp["w_proj"], kp["bias"])

    out = out_flat[:out_channels, :].reshape(out_channels, B, H, W)
    return jnp.transpose(out, (1, 0, 2, 3))


# ------------------- parameter setup / folding (host side) -------------------
def init_raw_params(key, Cin, Cout, K, expand_ratio, se_ratio):
    """Raw PyTorch-like parameters (conv weights + BatchNorm running stats)."""
    Cexp = Cin * expand_ratio
    Csq = int(Cin * se_ratio)
    ks = jax.random.split(key, 10)

    def u(k, shape, lo=-0.3, hi=0.3):
        return jax.random.uniform(k, shape, jnp.float32, lo, hi)

    def bn(k, C):
        k1, k2, k3, k4 = jax.random.split(k, 4)
        return dict(gamma=jax.random.uniform(k1, (C,), jnp.float32, 0.5, 1.5),
                    beta=u(k2, (C,), -0.1, 0.1),
                    mean=u(k3, (C,), -0.1, 0.1),
                    var=jax.random.uniform(k4, (C,), jnp.float32, 0.5, 1.5))

    return dict(
        w1=u(ks[0], (Cexp, Cin)), bn1=bn(ks[1], Cexp),          # expand 1x1
        wd=u(ks[2], (Cexp, K, K)), bn2=bn(ks[3], Cexp),         # depthwise KxK
        w_r=u(ks[4], (Csq, Cexp)), b_r=u(ks[5], (Csq,)),        # SE reduce
        w_e=u(ks[6], (Cexp, Csq)), b_e=u(ks[7], (Cexp,)),       # SE expand
        w3=u(ks[8], (Cout, Cexp)), bn3=bn(ks[9], Cout),         # project 1x1
    )


def prepare_params(raw, *, K, H, W, eps=1e-5):
    """Fold BN scales into weights, pad channels to sublane multiples of 8,
    pack all per-channel bias columns into one operand."""
    Cexp, Cin = raw["w1"].shape
    Cout = raw["w3"].shape[0]
    Csq = raw["w_r"].shape[0]
    Cin_p, Cexp_p, Cout_p, Csq_p = (_round_up(c, 8) for c in (Cin, Cexp, Cout, Csq))

    def fold(bn):
        s = bn["gamma"] / jnp.sqrt(bn["var"] + eps)
        return s, bn["beta"] - bn["mean"] * s

    def pad2(a, rows, cols):
        return jnp.pad(a, ((0, rows - a.shape[0]), (0, cols - a.shape[1])))

    def col(v, rows):
        return jnp.pad(v, (0, rows - v.shape[0]))[:, None]

    s1, sh1 = fold(raw["bn1"])
    s2, sh2 = fold(raw["bn2"])
    s3, sh3 = fold(raw["bn3"])

    w_dw = raw["wd"] * s2[:, None, None]                       # (Cexp, K, K)
    w_dw = jnp.pad(w_dw, ((0, Cexp_p - Cexp), (0, 0), (0, 0)))
    w_dw = jnp.transpose(w_dw, (1, 2, 0)).reshape(K * K, Cexp_p)[:, :, None]

    # Depthwise zero-padding boundary masks, one per (dh, dw) tap: (K*K, 1, HW).
    P = (K - 1) // 2
    hh, ww = np.meshgrid(np.arange(H), np.arange(W), indexing="ij")
    masks = []
    for dh in range(K):
        for dw in range(K):
            oh, ow = dh - P, dw - P
            valid = ((hh + oh >= 0) & (hh + oh < H)
                     & (ww + ow >= 0) & (ww + ow < W))
            masks.append(valid.reshape(1, H * W).astype(np.float32))
    dw_mask = jnp.asarray(np.stack(masks, axis=0))

    # Packed bias column: [b1 | b2 | b_see | b_ser | b3]; all offsets are x8.
    bias = jnp.concatenate([col(sh1, Cexp_p), col(sh2, Cexp_p),
                            col(raw["b_e"], Cexp_p), col(raw["b_r"], Csq_p),
                            col(sh3, Cout_p)], axis=0)

    return dict(
        w_exp=pad2(raw["w1"] * s1[:, None], Cexp_p, Cin_p),
        w_dw=w_dw, dw_mask=dw_mask,
        w_ser=pad2(raw["w_r"], Csq_p, Cexp_p),
        w_see=pad2(raw["w_e"], Cexp_p, Csq_p),
        w_proj=pad2(raw["w3"] * s3[:, None], Cout_p, Cexp_p),
        bias=bias,
    )


# ----------------------- pure-JAX reference (NCHW, raw) -----------------------
def mbconv_ref(x, rp, *, K, has_shortcut, eps=1e-5):
    B, Cin, H, W = x.shape
    P = (K - 1) // 2

    def bn(v, p):
        s = p["gamma"] / jnp.sqrt(p["var"] + eps)
        b = p["beta"] - p["mean"] * s
        return v * s[None, :, None, None] + b[None, :, None, None]

    t = jnp.einsum("bchw,ec->behw", x, rp["w1"])
    t = _silu(bn(t, rp["bn1"]))
    tp = jnp.pad(t, ((0, 0), (0, 0), (P, P), (P, P)))
    acc = jnp.zeros_like(t)
    for dh in range(K):
        for dw in range(K):
            acc = acc + tp[:, :, dh:dh + H, dw:dw + W] \
                * rp["wd"][:, dh, dw][None, :, None, None]
    acc = _silu(bn(acc, rp["bn2"]))
    pool = acc.mean(axis=(2, 3))                                 # (B, Cexp)
    s = _silu(pool @ rp["w_r"].T + rp["b_r"])                    # (B, Csq)
    s = jax.nn.sigmoid(s @ rp["w_e"].T + rp["b_e"])              # (B, Cexp)
    acc = acc * s[:, :, None, None]
    out = bn(jnp.einsum("behw,oe->bohw", acc, rp["w3"]), rp["bn3"])
    if has_shortcut:
        out = out + x
    return out


if __name__ == "__main__":
    key = jax.random.PRNGKey(0)
    kx, kparam = jax.random.split(key)

    # MBConv(kernel_size=3, in=4, out=4, expand_ratio=4, stride=1,
    #        se_ratio=0.25, drop_rate=0.2, norm_layer=BatchNorm2d) in eval mode.
    B, Cin, H, W = 2, 4, 16, 16
    kernel_size, expand_ratio, stride, se_ratio = 3, 4, 1, 0.25
    Cout = Cin
    has_shortcut = (stride == 1 and Cin == Cout)

    x = jax.random.normal(kx, (B, Cin, H, W), jnp.float32)       # PyTorch NCHW
    raw = init_raw_params(kparam, Cin, Cout, kernel_size, expand_ratio, se_ratio)
    kp = prepare_params(raw, K=kernel_size, H=H, W=W)

    out = mbconv_pallas(x, kp, kernel_size=kernel_size, stride=stride,
                        has_shortcut=has_shortcut, out_channels=Cout)
    out = jax.block_until_ready(out)

    ref = mbconv_ref(x, raw, K=kernel_size, has_shortcut=has_shortcut)
    np.testing.assert_allclose(np.asarray(out), np.asarray(ref),
                               rtol=1e-4, atol=1e-4)
    print("KERNEL_OK")
</pallas_src>

<mosaic_0001>
module attributes {stable_mosaic.version = 11 : i64} {
  func.func @_mbconv_kernel(%arg0: i32, %arg1: memref<8x256xf32, #tpu.memory_space<vmem>>, %arg2: memref<16x8xf32, #tpu.memory_space<vmem>>, %arg3: memref<9x16x1xf32, #tpu.memory_space<vmem>>, %arg4: memref<9x1x256xf32, #tpu.memory_space<vmem>>, %arg5: memref<8x16xf32, #tpu.memory_space<vmem>>, %arg6: memref<16x8xf32, #tpu.memory_space<vmem>>, %arg7: memref<8x16xf32, #tpu.memory_space<vmem>>, %arg8: memref<64x1xf32, #tpu.memory_space<vmem>>, %arg9: memref<8x256xf32, #tpu.memory_space<vmem>>) attributes {dimension_semantics = [#tpu.dimension_semantics<parallel>], iteration_bounds = array<i64: 2>, scalar_prefetch = 0 : i64, scratch_operands = 0 : i64, tpu.core_type = #tpu.core_type<tc>, window_params = [{transform_indices = @transform_0, window_bounds = array<i64: 8, 256>}, {pipeline_mode = #tpu.pipeline_mode<synchronous>, transform_indices = @transform_1, window_bounds = array<i64: 16, 8>}, {pipeline_mode = #tpu.pipeline_mode<synchronous>, transform_indices = @transform_2, window_bounds = array<i64: 9, 16, 1>}, {pipeline_mode = #tpu.pipeline_mode<synchronous>, transform_indices = @transform_3, window_bounds = array<i64: 9, 1, 256>}, {pipeline_mode = #tpu.pipeline_mode<synchronous>, transform_indices = @transform_4, window_bounds = array<i64: 8, 16>}, {pipeline_mode = #tpu.pipeline_mode<synchronous>, transform_indices = @transform_5, window_bounds = array<i64: 16, 8>}, {pipeline_mode = #tpu.pipeline_mode<synchronous>, transform_indices = @transform_6, window_bounds = array<i64: 8, 16>}, {pipeline_mode = #tpu.pipeline_mode<synchronous>, transform_indices = @transform_7, window_bounds = array<i64: 64, 1>}, {transform_indices = @transform_8, window_bounds = array<i64: 8, 256>}]} {
    %c0 = arith.constant 0 : index
    %c0_0 = arith.constant 0 : index
    %0 = vector.load %arg1[%c0, %c0_0] : memref<8x256xf32, #tpu.memory_space<vmem>>, vector<8x256xf32>
    %c0_1 = arith.constant 0 : index
    %c0_2 = arith.constant 0 : index
    %1 = vector.load %arg2[%c0_1, %c0_2] : memref<16x8xf32, #tpu.memory_space<vmem>>, vector<16x8xf32>
    %c0_3 = arith.constant 0 : index
    %c0_4 = arith.constant 0 : index
    %c0_5 = arith.constant 0 : index
    %2 = vector.load %arg3[%c0_3, %c0_4, %c0_5] : memref<9x16x1xf32, #tpu.memory_space<vmem>>, vector<9x16x1xf32>
    %c0_6 = arith.constant 0 : index
    %c0_7 = arith.constant 0 : index
    %c0_8 = arith.constant 0 : index
    %3 = vector.load %arg4[%c0_6, %c0_7, %c0_8] : memref<9x1x256xf32, #tpu.memory_space<vmem>>, vector<9x1x256xf32>
    %c0_9 = arith.constant 0 : index
    %c0_10 = arith.constant 0 : index
    %4 = vector.load %arg5[%c0_9, %c0_10] : memref<8x16xf32, #tpu.memory_space<vmem>>, vector<8x16xf32>
    %c0_11 = arith.constant 0 : index
    %c0_12 = arith.constant 0 : index
    %5 = vector.load %arg6[%c0_11, %c0_12] : memref<16x8xf32, #tpu.memory_space<vmem>>, vector<16x8xf32>
    %c0_13 = arith.constant 0 : index
    %c0_14 = arith.constant 0 : index
    %6 = vector.load %arg7[%c0_13, %c0_14] : memref<8x16xf32, #tpu.memory_space<vmem>>, vector<8x16xf32>
    %c0_15 = arith.constant 0 : index
    %c0_16 = arith.constant 0 : index
    %7 = vector.load %arg8[%c0_15, %c0_16] : memref<64x1xf32, #tpu.memory_space<vmem>>, vector<64x1xf32>
    %8 = vector.extract_strided_slice %7 {offsets = [0, 0], sizes = [16, 1], strides = [1, 1]} : vector<64x1xf32> to vector<16x1xf32>
    %9 = vector.extract_strided_slice %7 {offsets = [16, 0], sizes = [16, 1], strides = [1, 1]} : vector<64x1xf32> to vector<16x1xf32>
    %10 = vector.extract_strided_slice %7 {offsets = [32, 0], sizes = [16, 1], strides = [1, 1]} : vector<64x1xf32> to vector<16x1xf32>
    %11 = vector.extract_strided_slice %7 {offsets = [48, 0], sizes = [8, 1], strides = [1, 1]} : vector<64x1xf32> to vector<8x1xf32>
    %12 = vector.extract_strided_slice %7 {offsets = [56, 0], sizes = [8, 1], strides = [1, 1]} : vector<64x1xf32> to vector<8x1xf32>
    %cst = arith.constant dense<0.000000e+00> : vector<16x256xf32>
    %13 = tpu.matmul %1, %0, %cst {dimension_numbers = #tpu.dot_dimension_numbers<[1], [0], [0], [1], [0, 0, 1, 1], [], []>} : vector<16x8xf32>, vector<8x256xf32>, vector<16x256xf32> -> vector<16x256xf32>
    %14 = vector.broadcast %8 : vector<16x1xf32> to vector<16x256xf32>
    %15 = arith.addf %13, %14 : vector<16x256xf32>
    %16 = arith.negf %15 : vector<16x256xf32>
    %17 = math.exp %16 : vector<16x256xf32>
    %cst_17 = arith.constant 1.000000e+00 : f32
    %18 = vector.broadcast %cst_17 : f32 to vector<16x256xf32>
    %19 = arith.addf %18, %17 : vector<16x256xf32>
    %20 = arith.divf %18, %19 : vector<16x256xf32>
    %21 = arith.mulf %15, %20 : vector<16x256xf32>
    %22 = vector.extract_strided_slice %2 {offsets = [4, 0, 0], sizes = [1, 16, 1], strides = [1, 1, 1]} : vector<9x16x1xf32> to vector<1x16x1xf32>
    %23 = vector.shape_cast %22 : vector<1x16x1xf32> to vector<16x1xf32>
    %24 = vector.broadcast %23 : vector<16x1xf32> to vector<16x256xf32>
    %25 = arith.mulf %21, %24 : vector<16x256xf32>
    %c17_i32 = arith.constant 17 : i32
    %26 = tpu.dynamic_rotate %21 by %c17_i32 dim 1 : vector<16x256xf32>, i32 -> vector<16x256xf32>
    %27 = vector.extract_strided_slice %3 {offsets = [0, 0, 0], sizes = [1, 1, 256], strides = [1, 1, 1]} : vector<9x1x256xf32> to vector<1x1x256xf32>
    %28 = vector.shape_cast %27 : vector<1x1x256xf32> to vector<1x256xf32>
    %29 = vector.broadcast %28 : vector<1x256xf32> to vector<16x256xf32>
    %30 = arith.mulf %26, %29 : vector<16x256xf32>
    %31 = vector.extract_strided_slice %2 {offsets = [0, 0, 0], sizes = [1, 16, 1], strides = [1, 1, 1]} : vector<9x16x1xf32> to vector<1x16x1xf32>
    %32 = vector.shape_cast %31 : vector<1x16x1xf32> to vector<16x1xf32>
    %33 = vector.broadcast %32 : vector<16x1xf32> to vector<16x256xf32>
    %34 = arith.mulf %30, %33 : vector<16x256xf32>
    %35 = arith.addf %25, %34 : vector<16x256xf32>
    %c16_i32 = arith.constant 16 : i32
    %36 = tpu.dynamic_rotate %21 by %c16_i32 dim 1 : vector<16x256xf32>, i32 -> vector<16x256xf32>
    %37 = vector.extract_strided_slice %3 {offsets = [1, 0, 0], sizes = [1, 1, 256], strides = [1, 1, 1]} : vector<9x1x256xf32> to vector<1x1x256xf32>
    %38 = vector.shape_cast %37 : vector<1x1x256xf32> to vector<1x256xf32>
    %39 = vector.broadcast %38 : vector<1x256xf32> to vector<16x256xf32>
    %40 = arith.mulf %36, %39 : vector<16x256xf32>
    %41 = vector.extract_strided_slice %2 {offsets = [1, 0, 0], sizes = [1, 16, 1], strides = [1, 1, 1]} : vector<9x16x1xf32> to vector<1x16x1xf32>
    %42 = vector.shape_cast %41 : vector<1x16x1xf32> to vector<16x1xf32>
    %43 = vector.broadcast %42 : vector<16x1xf32> to vector<16x256xf32>
    %44 = arith.mulf %40, %43 : vector<16x256xf32>
    %45 = arith.addf %35, %44 : vector<16x256xf32>
    %c15_i32 = arith.constant 15 : i32
    %46 = tpu.dynamic_rotate %21 by %c15_i32 dim 1 : vector<16x256xf32>, i32 -> vector<16x256xf32>
    %47 = vector.extract_strided_slice %3 {offsets = [2, 0, 0], sizes = [1, 1, 256], strides = [1, 1, 1]} : vector<9x1x256xf32> to vector<1x1x256xf32>
    %48 = vector.shape_cast %47 : vector<1x1x256xf32> to vector<1x256xf32>
    %49 = vector.broadcast %48 : vector<1x256xf32> to vector<16x256xf32>
    %50 = arith.mulf %46, %49 : vector<16x256xf32>
    %51 = vector.extract_strided_slice %2 {offsets = [2, 0, 0], sizes = [1, 16, 1], strides = [1, 1, 1]} : vector<9x16x1xf32> to vector<1x16x1xf32>
    %52 = vector.shape_cast %51 : vector<1x16x1xf32> to vector<16x1xf32>
    %53 = vector.broadcast %52 : vector<16x1xf32> to vector<16x256xf32>
    %54 = arith.mulf %50, %53 : vector<16x256xf32>
    %55 = arith.addf %45, %54 : vector<16x256xf32>
    %c1_i32 = arith.constant 1 : i32
    %56 = tpu.dynamic_rotate %21 by %c1_i32 dim 1 : vector<16x256xf32>, i32 -> vector<16x256xf32>
    %57 = vector.extract_strided_slice %3 {offsets = [3, 0, 0], sizes = [1, 1, 256], strides = [1, 1, 1]} : vector<9x1x256xf32> to vector<1x1x256xf32>
    %58 = vector.shape_cast %57 : vector<1x1x256xf32> to vector<1x256xf32>
    %59 = vector.broadcast %58 : vector<1x256xf32> to vector<16x256xf32>
    %60 = arith.mulf %56, %59 : vector<16x256xf32>
    %61 = vector.extract_strided_slice %2 {offsets = [3, 0, 0], sizes = [1, 16, 1], strides = [1, 1, 1]} : vector<9x16x1xf32> to vector<1x16x1xf32>
    %62 = vector.shape_cast %61 : vector<1x16x1xf32> to vector<16x1xf32>
    %63 = vector.broadcast %62 : vector<16x1xf32> to vector<16x256xf32>
    %64 = arith.mulf %60, %63 : vector<16x256xf32>
    %65 = arith.addf %55, %64 : vector<16x256xf32>
    %c255_i32 = arith.constant 255 : i32
    %66 = tpu.dynamic_rotate %21 by %c255_i32 dim 1 : vector<16x256xf32>, i32 -> vector<16x256xf32>
    %67 = vector.extract_strided_slice %3 {offsets = [5, 0, 0], sizes = [1, 1, 256], strides = [1, 1, 1]} : vector<9x1x256xf32> to vector<1x1x256xf32>
    %68 = vector.shape_cast %67 : vector<1x1x256xf32> to vector<1x256xf32>
    %69 = vector.broadcast %68 : vector<1x256xf32> to vector<16x256xf32>
    %70 = arith.mulf %66, %69 : vector<16x256xf32>
    %71 = vector.extract_strided_slice %2 {offsets = [5, 0, 0], sizes = [1, 16, 1], strides = [1, 1, 1]} : vector<9x16x1xf32> to vector<1x16x1xf32>
    %72 = vector.shape_cast %71 : vector<1x16x1xf32> to vector<16x1xf32>
    %73 = vector.broadcast %72 : vector<16x1xf32> to vector<16x256xf32>
    %74 = arith.mulf %70, %73 : vector<16x256xf32>
    %75 = arith.addf %65, %74 : vector<16x256xf32>
    %c241_i32 = arith.constant 241 : i32
    %76 = tpu.dynamic_rotate %21 by %c241_i32 dim 1 : vector<16x256xf32>, i32 -> vector<16x256xf32>
    %77 = vector.extract_strided_slice %3 {offsets = [6, 0, 0], sizes = [1, 1, 256], strides = [1, 1, 1]} : vector<9x1x256xf32> to vector<1x1x256xf32>
    %78 = vector.shape_cast %77 : vector<1x1x256xf32> to vector<1x256xf32>
    %79 = vector.broadcast %78 : vector<1x256xf32> to vector<16x256xf32>
    %80 = arith.mulf %76, %79 : vector<16x256xf32>
    %81 = vector.extract_strided_slice %2 {offsets = [6, 0, 0], sizes = [1, 16, 1], strides = [1, 1, 1]} : vector<9x16x1xf32> to vector<1x16x1xf32>
    %82 = vector.shape_cast %81 : vector<1x16x1xf32> to vector<16x1xf32>
    %83 = vector.broadcast %82 : vector<16x1xf32> to vector<16x256xf32>
    %84 = arith.mulf %80, %83 : vector<16x256xf32>
    %85 = arith.addf %75, %84 : vector<16x256xf32>
    %c240_i32 = arith.constant 240 : i32
    %86 = tpu.dynamic_rotate %21 by %c240_i32 dim 1 : vector<16x256xf32>, i32 -> vector<16x256xf32>
    %87 = vector.extract_strided_slice %3 {offsets = [7, 0, 0], sizes = [1, 1, 256], strides = [1, 1, 1]} : vector<9x1x256xf32> to vector<1x1x256xf32>
    %88 = vector.shape_cast %87 : vector<1x1x256xf32> to vector<1x256xf32>
    %89 = vector.broadcast %88 : vector<1x256xf32> to vector<16x256xf32>
    %90 = arith.mulf %86, %89 : vector<16x256xf32>
    %91 = vector.extract_strided_slice %2 {offsets = [7, 0, 0], sizes = [1, 16, 1], strides = [1, 1, 1]} : vector<9x16x1xf32> to vector<1x16x1xf32>
    %92 = vector.shape_cast %91 : vector<1x16x1xf32> to vector<16x1xf32>
    %93 = vector.broadcast %92 : vector<16x1xf32> to vector<16x256xf32>
    %94 = arith.mulf %90, %93 : vector<16x256xf32>
    %95 = arith.addf %85, %94 : vector<16x256xf32>
    %c239_i32 = arith.constant 239 : i32
    %96 = tpu.dynamic_rotate %21 by %c239_i32 dim 1 : vector<16x256xf32>, i32 -> vector<16x256xf32>
    %97 = vector.extract_strided_slice %3 {offsets = [8, 0, 0], sizes = [1, 1, 256], strides = [1, 1, 1]} : vector<9x1x256xf32> to vector<1x1x256xf32>
    %98 = vector.shape_cast %97 : vector<1x1x256xf32> to vector<1x256xf32>
    %99 = vector.broadcast %98 : vector<1x256xf32> to vector<16x256xf32>
    %100 = arith.mulf %96, %99 : vector<16x256xf32>
    %101 = vector.extract_strided_slice %2 {offsets = [8, 0, 0], sizes = [1, 16, 1], strides = [1, 1, 1]} : vector<9x16x1xf32> to vector<1x16x1xf32>
    %102 = vector.shape_cast %101 : vector<1x16x1xf32> to vector<16x1xf32>
    %103 = vector.broadcast %102 : vector<16x1xf32> to vector<16x256xf32>
    %104 = arith.mulf %100, %103 : vector<16x256xf32>
    %105 = arith.addf %95, %104 : vector<16x256xf32>
    %106 = vector.broadcast %9 : vector<16x1xf32> to vector<16x256xf32>
    %107 = arith.addf %105, %106 : vector<16x256xf32>
    %108 = arith.negf %107 : vector<16x256xf32>
    %109 = math.exp %108 : vector<16x256xf32>
    %cst_18 = arith.constant 1.000000e+00 : f32
    %110 = vector.broadcast %cst_18 : f32 to vector<16x256xf32>
    %111 = arith.addf %110, %109 : vector<16x256xf32>
    %112 = arith.divf %110, %111 : vector<16x256xf32>
    %113 = arith.mulf %107, %112 : vector<16x256xf32>
    %cst_19 = arith.constant dense<0.000000e+00> : vector<16xf32>
    %114 = vector.multi_reduction <add>, %113, %cst_19 [1] : vector<16x256xf32> to vector<16xf32>
    %115 = vector.shape_cast %114 : vector<16xf32> to vector<16x1xf32>
    %cst_20 = arith.constant 2.560000e+02 : f32
    %116 = vector.broadcast %cst_20 : f32 to vector<16x1xf32>
    %117 = arith.divf %115, %116 : vector<16x1xf32>
    %cst_21 = arith.constant dense<0.000000e+00> : vector<8x1xf32>
    %118 = tpu.matmul %4, %117, %cst_21 {dimension_numbers = #tpu.dot_dimension_numbers<[1], [0], [0], [1], [0, 0, 1, 1], [], []>} : vector<8x16xf32>, vector<16x1xf32>, vector<8x1xf32> -> vector<8x1xf32>
    %119 = arith.addf %118, %11 : vector<8x1xf32>
    %120 = arith.negf %119 : vector<8x1xf32>
    %121 = math.exp %120 : vector<8x1xf32>
    %cst_22 = arith.constant 1.000000e+00 : f32
    %122 = vector.broadcast %cst_22 : f32 to vector<8x1xf32>
    %123 = arith.addf %122, %121 : vector<8x1xf32>
    %124 = arith.divf %122, %123 : vector<8x1xf32>
    %125 = arith.mulf %119, %124 : vector<8x1xf32>
    %cst_23 = arith.constant dense<0.000000e+00> : vector<16x1xf32>
    %126 = tpu.matmul %5, %125, %cst_23 {dimension_numbers = #tpu.dot_dimension_numbers<[1], [0], [0], [1], [0, 0, 1, 1], [], []>} : vector<16x8xf32>, vector<8x1xf32>, vector<16x1xf32> -> vector<16x1xf32>
    %127 = arith.addf %126, %10 : vector<16x1xf32>
    %128 = arith.negf %127 : vector<16x1xf32>
    %129 = math.exp %128 : vector<16x1xf32>
    %cst_24 = arith.constant 1.000000e+00 : f32
    %130 = vector.broadcast %cst_24 : f32 to vector<16x1xf32>
    %131 = arith.addf %130, %129 : vector<16x1xf32>
    %132 = arith.divf %130, %131 : vector<16x1xf32>
    %133 = vector.broadcast %132 : vector<16x1xf32> to vector<16x256xf32>
    %134 = arith.mulf %113, %133 : vector<16x256xf32>
    %cst_25 = arith.constant dense<0.000000e+00> : vector<8x256xf32>
    %135 = tpu.matmul %6, %134, %cst_25 {dimension_numbers = #tpu.dot_dimension_numbers<[1], [0], [0], [1], [0, 0, 1, 1], [], []>} : vector<8x16xf32>, vector<16x256xf32>, vector<8x256xf32> -> vector<8x256xf32>
    %136 = vector.broadcast %12 : vector<8x1xf32> to vector<8x256xf32>
    %137 = arith.addf %135, %136 : vector<8x256xf32>
    %138 = arith.addf %137, %0 : vector<8x256xf32>
    %c0_26 = arith.constant 0 : index
    %c0_27 = arith.constant 0 : index
    %139 = vector.load %arg9[%c0_26, %c0_27] : memref<8x256xf32, #tpu.memory_space<vmem>>, vector<8x256xf32>
    tpu.vector_store %arg9[%c0_26, %c0_27], %138 {strides = array<i32>} : memref<8x256xf32, #tpu.memory_space<vmem>>, vector<8x256xf32>,
    return
  }
  func.func @transform_0(%arg0: i32) -> (i32, i32) {
    %c0_i32 = arith.constant 0 : i32
    %c0_i32_0 = arith.constant 0 : i32
    return %c0_i32, %arg0 : i32, i32
  }
  func.func @transform_1(%arg0: i32) -> (i32, i32) {
    %c0_i32 = arith.constant 0 : i32
    %c0_i32_0 = arith.constant 0 : i32
    %c0_i32_1 = arith.constant 0 : i32
    return %c0_i32, %c0_i32_0 : i32, i32
  }
  func.func @transform_2(%arg0: i32) -> (i32, i32, i32) {
    %c0_i32 = arith.constant 0 : i32
    %c0_i32_0 = arith.constant 0 : i32
    %c0_i32_1 = arith.constant 0 : i32
    %c0_i32_2 = arith.constant 0 : i32
    return %c0_i32, %c0_i32_0, %c0_i32_1 : i32, i32, i32
  }
  func.func @transform_3(%arg0: i32) -> (i32, i32, i32) {
    %c0_i32 = arith.constant 0 : i32
    %c0_i32_0 = arith.constant 0 : i32
    %c0_i32_1 = arith.constant 0 : i32
    %c0_i32_2 = arith.constant 0 : i32
    return %c0_i32, %c0_i32_0, %c0_i32_1 : i32, i32, i32
  }
  func.func @transform_4(%arg0: i32) -> (i32, i32) {
    %c0_i32 = arith.constant 0 : i32
    %c0_i32_0 = arith.constant 0 : i32
    %c0_i32_1 = arith.constant 0 : i32
    return %c0_i32, %c0_i32_0 : i32, i32
  }
  func.func @transform_5(%arg0: i32) -> (i32, i32) {
    %c0_i32 = arith.constant 0 : i32
    %c0_i32_0 = arith.constant 0 : i32
    %c0_i32_1 = arith.constant 0 : i32
    return %c0_i32, %c0_i32_0 : i32, i32
  }
  func.func @transform_6(%arg0: i32) -> (i32, i32) {
    %c0_i32 = arith.constant 0 : i32
    %c0_i32_0 = arith.constant 0 : i32
    %c0_i32_1 = arith.constant 0 : i32
    return %c0_i32, %c0_i32_0 : i32, i32
  }
  func.func @transform_7(%arg0: i32) -> (i32, i32) {
    %c0_i32 = arith.constant 0 : i32
    %c0_i32_0 = arith.constant 0 : i32
    %c0_i32_1 = arith.constant 0 : i32
    return %c0_i32, %c0_i32_0 : i32, i32
  }
  func.func @transform_8(%arg0: i32) -> (i32, i32) {
    %c0_i32 = arith.constant 0 : i32
    %c0_i32_0 = arith.constant 0 : i32
    return %c0_i32, %arg0 : i32, i32
  }
}

</mosaic_0001>

<bundles_post_ra>
// kernel: tpu_custom_call.1
= control target key start
LH: loop header
LB: loop body
LE: loop exit
PB: predicated region body
PF: predicated region fallthrough
CT: control target
= control target key end

     0   :  { %13 = vsyncpa [#allocation3], 0  ;;  %s2072_s0 = inlined_call_operand.vmem [shape: f32[8,512], index: 0, kind: input, shape index: {}]   ;;  %s2073_s1 = inlined_call_operand.vmem [shape: f32[16,8], index: 1, kind: input, shape index: {}]   ;;  %s2074_s2 = inlined_call_operand.vmem [shape: f32[9,16,1], index: 2, kind: input, shape index: {}]   ;;  %s2075_s3 = inlined_call_operand.vmem [shape: f32[9,1,256], index: 3, kind: input, shape index: {}]   ;;  %s2076_s4 = inlined_call_operand.vmem [shape: f32[8,16], index: 4, kind: input, shape index: {}]   ;;  %s2077_s5 = inlined_call_operand.vmem [shape: f32[16,8], index: 5, kind: input, shape index: {}]   ;;  %s2078_s6 = inlined_call_operand.vmem [shape: f32[8,16], index: 6, kind: input, shape index: {}]   ;;  %s2079_s7 = inlined_call_operand.vmem [shape: f32[64,1], index: 7, kind: input, shape index: {}]   ;;  %s2080_s8 = inlined_call_operand.hbm [shape: f32[8,512], index: 8, kind: output, shape index: {}]  }
   0x1   :  { %15 = vsyncpa [#allocation3 + $0x1], 0  ;;  %s1525_s27 = smov 0   ;;  %s1527_s28 = smov 0  }
   0x2   :  { %s1529_s29 = smov 0   ;;  %s1531_s30 = smov 0  }
   0x3 LB: > { %s1546_s9 = sadd.s32 4294967295, %s1465_s30   ;;  %s1251_s10 = sadd.s32 4294967294, %s1465_s30   ;;  %s1465_s30 = sphi %s1531_s30, %s2094_s30   ;;  %s1461_s29 = sphi %s1529_s29, %s2093_s29   ;;  %s1457_s28 = sphi %s1527_s28, %s2092_s28   ;;  %s1453_s27 = sphi %s1525_s27, %s2091_s27  }
   0x4   : > { %s1550_s11 = sadd.s32 1, %s1465_s30   ;;  %s201_s12 = sadd.s32 1, %s1461_s29 }
   0x5   : > { %s198_s13 = ssub.s32 %s1465_s30, %s1550_s11  ;;  %p211_p0 = scmp.ne.s32.totalorder %s1461_s29, %s1457_s28 }
   0x6   : > { %p199_p1 = scmp.eq.s32.totalorder %s198_s13, 0  ;;  %p212_p2 = scmp.eq.s32.totalorder %s1546_s9, 1 }
   0x7   : > { %p217_p3 = scmp.ne.s32.totalorder %s1457_s28, %s1453_s27  ;;  %p218_p4 = scmp.eq.s32.totalorder %s1251_s10, 1 }
   0x8   : > { %s1561_s14 = scalar_select %p199_p1, %s1461_s29, %s201_s12  }
   0x9   : > { %p1563_p5 = por %p212_p2, %p211_p0  ;;  %p1567_p6 = por %p218_p4, %p217_p3 }
   0xa   : > { %p1254_p7 = scmp.ge.s32.totalorder %s1465_s30, 1  ;;  %p266_p8 = scmp.lt.s32.totalorder %s1465_s30, 3 }
   0xc   : > { %p267_p9 = pnand %p1254_p7, %p266_p8 }
   0xe   : > { %270 = sbr.rel (%p267_p9) target bundleno = 1502 (0x5de), region = 52 }
  0x15   : > { %s1256_s17 = sshll.u32 %s1546_s9, 1  ;;  %v2081_v0 = vmov 0.0   ;;  %v1468_v1 = vmov 0   ;;  %v341_v2 = vld [vmem:[%s2079_s7] sm:$0xff]  ;;  %v342_v3 = vld [vmem:[%s2079_s7 + $0x8] sm:$0xff]  ;;  %vm359_vm0 = vcmask 64512  }
  0x16   : > { %p301_p10 = scmp.lt.s32.totalorder %s1256_s17, 3  ;;  %430 = vmatprep.mubr.f32.mxu0 %v2081_v0  ;;  %1357 = vset.pattern.permute.xlu0 %v1468_v1  ;;  %v319_v4 = vld [vmem:[%s2074_s2 + $0x40] sm:$0xff]  ;;  %v320_v6 = vld [vmem:[%s2074_s2 + $0x48] sm:$0xff]  ;;  %v313_v12 = vld [vmem:[%s2074_s2 + $0x10] sm:$0xff]  ;;  %s1470_s12 = smov 16   ;;  %vm1478_vm9 = vmmov 0  }
  0x17   : > { %351 = vperm.xlu0 %1357, %v341_v2   ;;  %1358 = vset.pattern.permute.xlu1 %v1468_v1  ;;  %v309_v5 = vld [vmem:[%s2073_s1] sm:$0xff]  ;;  %v312_v10 = vld [vmem:[%s2074_s2 + $0x8] sm:$0xff]  ;;  %v314_v13 = vld [vmem:[%s2074_s2 + $0x18] sm:$0xff]  ;;  %s1471_s13 = smov 15   ;;  %s1472_s18 = smov 1   ;;  %vm906_vm10 = vcmask 130048  }
  0x18   : > { %s2096_s17 = smov (!%p301_p10, %s1256_s17), 3  ;;  %473 = vperm.xlu1 %1358, %v319_v4   ;;  %v311_v9 = vld [vmem:[%s2074_s2] sm:$0xff]  ;;  %v310_v11 = vld [vmem:[%s2073_s1 + $0x8] sm:$0xff]  ;;  %v317_v16 = vld [vmem:[%s2074_s2 + $0x30] sm:$0xff]  ;;  %s1473_s19 = smov 127  }
  0x19   : > { %s1257_s24 = sshll.u32 %s2096_s17, 3  ;;  %v315_v14 = vld [vmem:[%s2074_s2 + $0x20] sm:$0xff]  ;;  %v316_v15 = vld [vmem:[%s2074_s2 + $0x28] sm:$0xff]  ;;  %v318_v17 = vld [vmem:[%s2074_s2 + $0x38] sm:$0xff]  ;;  %s1474_s17 = smov 113  }
  0x1a   : > { %s304_s10 = scalar_lea.vmem %s2072_s0, %s1257_s24  ;;  %v321_v18 = vld [vmem:[%s2074_s2 + $0x50] sm:$0xff]  ;;  %v322_v19 = vld [vmem:[%s2074_s2 + $0x58] sm:$0xff]  ;;  %v323_v20 = vld [vmem:[%s2074_s2 + $0x60] sm:$0xff]  ;;  %s1475_s20 = smov 112  }
  0x1b   : > { %356 = vperm.xlu0 %1357, %v342_v3   ;;  %v1593_v7 = vld [vmem:[%s304_s10 + $0x8] sm:$0xff]  ;;  %v1595_v8 = vld [vmem:[%s304_s10] sm:$0xff]  ;;  %v325_v22 = vld [vmem:[%s2074_s2 + $0x70] sm:$0xff]  ;;  %s1469_s10 = smov 17   ;;  %s1476_s21 = smov 111  }
  0x1c   : > { %2086 = vst [vmem:[#allocation5_spill] sm:$0xff] %v1593_v7  ;;  %2087 = vst [vmem:[#allocation6_spill] sm:$0xff] %v1595_v8  ;;  %366 = vmatprep.subr.mxu0 %v1593_v7  ;;  %478 = vperm.xlu1 %1358, %v320_v6   ;;  %v324_v21 = vld [vmem:[%s2074_s2 + $0x68] sm:$0xff]  ;;  %v326_v23 = vld [vmem:[%s2074_s2 + $0x78] sm:$0xff] }
  0x1d   : > { %367 = vmatpush1.msra.mxu0 %v1595_v8  ;;  %v327_v24 = vld [vmem:[%s2074_s2 + $0x80] sm:$0xff]  ;;  %v328_v25 = vld [vmem:[%s2074_s2 + $0x88] sm:$0xff]  ;;  %v343_v56 = vld [vmem:[%s2079_s7 + $0x10] sm:$0xff] }
  0x1e   : > { %1258 = vmatmul.mubr.msk.f32.vlgmr.msra.gmra.mrb[0].mxu0 %vm359_vm0, %v309_v5  ;;  %v344_v58 = vld [vmem:[%s2079_s7 + $0x18] sm:$0xff] }
  0x1f   : > { %517 = vperm.xlu0 %1357, %v311_v9   ;;  %436 = vmatprep.mubr.f32.mxu0 %v2081_v0 }
  0x20   : > { %522 = vperm.xlu1 %1358, %v312_v10  }
  0x22   : > { %1259 = vmatmul.mubr.msk.f32.gmra.mrb[2].mxu0 %vm359_vm0, %v310_v11 }
  0x23   : > { %563 = vperm.xlu0 %1357, %v313_v12   ;;  %1166 = vmatprep.mubr.f32.mxu0 %v2081_v0 }
  0x24   : > { %568 = vperm.xlu1 %1358, %v314_v13  }
  0x27   : > { %609 = vperm.xlu0 %1357, %v315_v14  }
  0x28   : > { %614 = vperm.xlu1 %1358, %v316_v15  }
  0x2b   : > { %655 = vperm.xlu0 %1357, %v317_v16  }
  0x2c   : > { %660 = vperm.xlu1 %1358, %v318_v17  }
  0x2f   : > { %701 = vperm.xlu0 %1357, %v321_v18  }
  0x30   : > { %706 = vperm.xlu1 %1358, %v322_v19  }
  0x33   : > { %747 = vperm.xlu0 %1357, %v323_v20  }
  0x34   : > { %752 = vperm.xlu1 %1358, %v324_v21  }
  0x37   : > { %793 = vperm.xlu0 %1357, %v325_v22  }
  0x38   : > { %798 = vperm.xlu1 %1358, %v326_v23  }
  0x3b   : > { %839 = vperm.xlu0 %1357, %v327_v24   ;;  %v493_v24 = vlaneseq }
  0x3c   : > { %844 = vperm.xlu1 %1358, %v328_v25  }
  0x96   : > { %v352_v26 = vpop.permute.xlu0 %351 }
  0x97   : > { %v474_v57 = vpop.permute.xlu1 %473 }
  0x9a   : > { %v357_v31 = vpop.permute.xlu0 %356 }
  0x9b   : > { %v479_v60 = vpop.permute.xlu1 %478 }
  0x9e   : > { %v1716_v59 = vpop.permute.xlu0 %517 }
  0x9f   : > { %v1718_v61 = vpop.permute.xlu1 %522 }
  0xa2   : > { %v1720_v62 = vpop.permute.xlu0 %563 }
  0xa3   : > { %v1722_v63 = vpop.permute.xlu1 %568 }
  0xa6   : > { %v1724_v1 = vpop.permute.xlu0 %609 }
  0xa7   : > { %v1726_v2 = vpop.permute.xlu1 %614 }
  0xaa   : > { %v1728_v3 = vpop.permute.xlu0 %655 }
  0xab   : > { %v1730_v4 = vpop.permute.xlu1 %660 }
  0xae   : > { %v1732_v5 = vpop.permute.xlu0 %701 }
  0xaf   : > { %v1734_v6 = vpop.permute.xlu1 %706 }
  0xb2   : > { %v1736_v9 = vpop.permute.xlu0 %747 }
  0xb3   : > { %v1738_v10 = vpop.permute.xlu1 %752 }
  0xb6   : > { %v1740_v11 = vpop.permute.xlu0 %793 }
  0xb7   : > { %v1742_v12 = vpop.permute.xlu1 %798 }
  0xba   : > { %v1744_v13 = vpop.permute.xlu0 %839 }
  0xbb   : > { %v1746_v14 = vpop.permute.xlu1 %844 }
  0xf1   : > { %v432_v27 = vpop.f32.mrb[0].mxu0 }
  0xf2   : > { %v433_v28 = vadd.f32 %v432_v27, %v352_v26  ;;  %v434_v29 = vpop.f32.mrb[1].mxu0  ;;  %v502_v27 = vshrl.u32 %v493_v24, 7 }
  0xf3   : > { %v435_v40 = vadd.f32 %v434_v29, %v352_v26 }
  0xf4   : > { %v1260_v30 = vmul.f32 -1.442695, %v433_v28 }
  0xf5   : > { %v438_v32 = vpop.f32.mrb[2].mxu0  ;;  %v1261_v41 = vmul.f32 -1.442695, %v435_v40 }
  0xf6   : > { %1359 = vpow2.f32 %v1260_v30  ;;  %v439_v33 = vadd.f32 %v438_v32, %v357_v31  ;;  %v440_v34 = vpop.f32.mrb[3].mxu0  ;;  %v1768_v30 = vand.u32 127, %v493_v24  ;;  %v1772_v32 = vsub.s32 1, %v502_v27 }
  0xf7   : > { %v441_v42 = vadd.f32 %v440_v34, %v357_v31  ;;  %v1770_v31 = vsub.s32 0, %v502_v27  ;;  %v334_v27 = vld [vmem:[%s2075_s3 + $0xc] sm:$0x3] }
  0xf8   : > { %v1262_v35 = vmul.f32 -1.442695, %v439_v33  ;;  %vm495_vm1 = vcmp.lt.s32.totalorder %v1768_v30, 17  ;;  %vm541_vm2 = vcmp.lt.s32.totalorder %v1768_v30, 16  ;;  %vm587_vm3 = vcmp.lt.s32.totalorder %v1768_v30, 15 }
  0xf9   : > { %v1263_v45 = vmul.f32 -1.442695, %v441_v42  ;;  %vm633_vm4 = vcmp.lt.s32.totalorder %v1768_v30, 1  ;;  %vm679_vm5 = vcmp.lt.s32.totalorder %v1768_v30, 127  ;;  %vm725_vm6 = vcmp.lt.s32.totalorder %v1768_v30, 113 }
  0xfa   : > { %1361 = vpow2.f32 %v1262_v35  ;;  %vm771_vm7 = vcmp.lt.s32.totalorder %v1768_v30, 112  ;;  %vm817_vm8 = vcmp.lt.s32.totalorder %v1768_v30, 111 }
 0x100   : > { %v1360_v36 = vpop.eup %1359 }
 0x101   : > { %v455_v37 = vadd.f32 1.0, %v1360_v36 }
 0x103   : > { %1363 = vrcp.f32 %v455_v37 }
 0x104   : > { %v1362_v38 = vpop.eup %1361 }
 0x105   : > { %v457_v39 = vadd.f32 1.0, %v1362_v38  ;;  %v330_v38 = vld [vmem:[%s2075_s3 + $0x2] sm:$0x3] }
 0x107   : > { %1365 = vrcp.f32 %v457_v39 }
 0x108   : > { %1367 = vpow2.f32 %v1261_v41 }
 0x109   : > { %1369 = vpow2.f32 %v1263_v45  ;;  %v331_v45 = vld [vmem:[%s2075_s3 + $0x4] sm:$0x3] }
 0x10d   : > { %v1364_v43 = vpop.eup %1363 }
 0x10e   : > { %v1654_v44 = vmul.f32 %v1364_v43, %v433_v28 }
 0x110   : > { %485 = vrot.lane.b32.xlu0 %v1654_v44, %s1469_s10  ;;  %v481_v39 = vmul.f32 %v474_v57, %v1654_v44 }
 0x111   : > { %v1366_v46 = vpop.eup %1365 }
 0x112   : > { %v1658_v47 = vmul.f32 %v1366_v46, %v439_v33  ;;  %v1368_v48 = vpop.eup %1367  ;;  %v329_v33 = vld [vmem:[%s2075_s3] sm:$0x3] }
 0x113   : > { %v456_v49 = vadd.f32 1.0, %v1368_v48  ;;  %v1370_v50 = vpop.eup %1369  ;;  %v504_v36 = vrot.slane %v329_v33, %v1770_v31  ;;  %v508_v37 = vrot.slane %v329_v33, %v1772_v32 }
 0x114   : > { %487 = vrot.lane.b32.xlu1 %v1658_v47, %s1469_s10  ;;  %533 = vrot.lane.b32.xlu0 %v1654_v44, %s1470_s12  ;;  %v458_v51 = vadd.f32 1.0, %v1370_v50  ;;  %v483_v41 = vmul.f32 %v479_v60, %v1658_v47 }
 0x115   : > { %1371 = vrcp.f32 %v456_v49 }
 0x116   : > { %1373 = vrcp.f32 %v458_v51  ;;  %v550_v51 = vrot.slane %v330_v38, %v1770_v31 }
 0x118   : > { %535 = vrot.lane.b32.xlu1 %v1658_v47, %s1470_s12  ;;  %579 = vrot.lane.b32.xlu0 %v1654_v44, %s1471_s13 }
 0x11c   : > { %581 = vrot.lane.b32.xlu1 %v1658_v47, %s1471_s13  ;;  %625 = vrot.lane.b32.xlu0 %v1654_v44, %s1472_s18 }
 0x11f   : > { %v1372_v52 = vpop.eup %1371 }
 0x120   : > { %627 = vrot.lane.b32.xlu1 %v1658_v47, %s1472_s18  ;;  %671 = vrot.lane.b32.xlu0 %v1654_v44, %s1473_s19  ;;  %v1681_v53 = vmul.f32 %v1372_v52, %v435_v40  ;;  %v1374_v54 = vpop.eup %1373  ;;  %v554_v52 = vrot.slane %v330_v38, %v1772_v32 }
 0x121   : > { %v1686_v55 = vmul.f32 %v1374_v54, %v441_v42  ;;  %v600_v54 = vrot.slane %v331_v45, %v1772_v32 }
 0x122   : > { %v482_v40 = vmul.f32 %v474_v57, %v1681_v53 }
 0x123   : > { %v484_v46 = vmul.f32 %v479_v60, %v1686_v55 }
 0x124   : > { %673 = vrot.lane.b32.xlu1 %v1658_v47, %s1473_s19  ;;  %717 = vrot.lane.b32.xlu0 %v1654_v44, %s1474_s17 }
 0x128   : > { %719 = vrot.lane.b32.xlu1 %v1658_v47, %s1474_s17  ;;  %763 = vrot.lane.b32.xlu0 %v1654_v44, %s1475_s20 }
 0x12c   : > { %765 = vrot.lane.b32.xlu1 %v1658_v47, %s1475_s20  ;;  %809 = vrot.lane.b32.xlu0 %v1654_v44, %s1476_s21  ;;  %v332_v44 = vld [vmem:[%s2075_s3 + $0x6] sm:$0x3] }
 0x12d   : > { %v1819_v24 = vrot.slane %v332_v44, %v1772_v32 }
 0x130   : > { %811 = vrot.lane.b32.xlu1 %v1658_v47, %s1476_s21  ;;  %489 = vrot.lane.b32.xlu0 %v1681_v53, %s1469_s10 }
 0x134   : > { %491 = vrot.lane.b32.xlu1 %v1686_v55, %s1469_s10  ;;  %537 = vrot.lane.b32.xlu0 %v1681_v53, %s1470_s12 }
 0x138   : > { %539 = vrot.lane.b32.xlu1 %v1686_v55, %s1470_s12  ;;  %583 = vrot.lane.b32.xlu0 %v1681_v53, %s1471_s13  ;;  %s1479_s12 = smov [#allocation2]  }
 0x13c   : > { %585 = vrot.lane.b32.xlu1 %v1686_v55, %s1471_s13  ;;  %629 = vrot.lane.b32.xlu0 %v1681_v53, %s1472_s18  ;;  %s1407_s13 = sshll.u32 %s1479_s12, 4  ;;  %s1408_s13 = int_to_ptr.vmem [resolvable:$false] %s1407_s13 }
 0x140   : > { %631 = vrot.lane.b32.xlu1 %v1686_v55, %s1472_s18  ;;  %675 = vrot.lane.b32.xlu0 %v1681_v53, %s1473_s19  ;;  %s1409_s18 = scalar_lea.vmem %s1408_s13, 512 }
 0x144   : > { %677 = vrot.lane.b32.xlu1 %v1686_v55, %s1473_s19  ;;  %721 = vrot.lane.b32.xlu0 %v1681_v53, %s1474_s17 }
 0x148   : > { %723 = vrot.lane.b32.xlu1 %v1686_v55, %s1474_s17  ;;  %767 = vrot.lane.b32.xlu0 %v1681_v53, %s1475_s20  ;;  %s297_s17 = sand.u32 1, %s1457_s28  }
 0x14c   : > { %769 = vrot.lane.b32.xlu1 %v1686_v55, %s1475_s20  ;;  %813 = vrot.lane.b32.xlu0 %v1681_v53, %s1476_s21  ;;  %v596_v53 = vrot.slane %v331_v45, %v1770_v31  ;;  %v335_v45 = vld [vmem:[%s2075_s3 + $0xe] sm:$0x3]  ;;  %s1255_s20 = sshll.u32 %s297_s17, 4 }
 0x14d   : > { %s299_s22 = scalar_lea.vmem [#allocation2], %s1255_s20 }
 0x14e   : > { %s1192_s23 = sshll.u32 %s299_s22, 4  ;;  %s2032_s23 = int_to_ptr.vmem [resolvable:$true] %s1192_s23 }
 0x14f   : > { %s1403_s10 = scalar_lea.vmem %s2032_s23, 256  ;;  %p1410_p0 = scmp.lt.s32.totalorder %s2032_s23, %s1408_s13 }
 0x150   : > { %815 = vrot.lane.b32.xlu1 %v1686_v55, %s1476_s21  ;;  %857 = vperm.xlu0 %1357, %v343_v56   ;;  %v333_v55 = vld [vmem:[%s2075_s3 + $0xa] sm:$0x3]  ;;  %s1280_s21 = sshll.u32 %s1546_s9, 8  ;;  %s1178_s9 = scalar_lea.sflag [#allocation3], %s297_s17 }
 0x151   : > { %s2030_s26 = scalar_lea.hbm %s2080_s8, %s1280_s21  ;;  %p1404_p11 = scmp.ne.s32.totalorder %s2032_s23, %s1403_s10 }
 0x152   : > { %p1411_p1 = scmp.lt.s32.totalorder %s1409_s18, %s1403_s10 }
 0x153   : > { %p1405_p12 = pnand %p1404_p11, %p1563_p5 }
 0x154   : > { %862 = vperm.xlu1 %1358, %v344_v58   ;;  %p1412_p2 = por %p1411_p1, %p1410_p0 }
 0x155   : > { %p1406_p13 = pneg %p1405_p12 }
 0x157   : > { %p1413_p3 = pnand %p1412_p2, %p1406_p13 }
 0x182   : > { %v486_v15 = vpop.permute.xlu0 %485 }
 0x186   : > { %v488_v16 = vpop.permute.xlu1 %487  ;;  %v534_v17 = vpop.permute.xlu0 %533 }
 0x18a   : > { %v1748_v18 = vpop.permute.xlu1 %535  ;;  %v1750_v19 = vpop.permute.xlu0 %579 }
 0x18e   : > { %v1752_v20 = vpop.permute.xlu1 %581  ;;  %v1754_v21 = vpop.permute.xlu0 %625 }
 0x192   : > { %v1756_v22 = vpop.permute.xlu1 %627  ;;  %v1758_v23 = vpop.permute.xlu0 %671 }
 0x196   : > { %v1760_v25 = vpop.permute.xlu1 %673  ;;  %v1762_v26 = vpop.permute.xlu0 %717 }
 0x19a   : > { %v1764_v28 = vpop.permute.xlu1 %719  ;;  %v1766_v29 = vpop.permute.xlu0 %763 }
 0x19e   : > { %v1777_v34 = vpop.permute.xlu1 %765  ;;  %v1779_v35 = vpop.permute.xlu0 %809 }
 0x1a2   : > { %v1790_v42 = vpop.permute.xlu1 %811  ;;  %v490_v43 = vpop.permute.xlu0 %489 }
 0x1a3   : > { %v496_v48 = vsel %vm495_vm1, %v486_v15, %v490_v43  ;;  %v498_v49 = vsel %vm495_vm1, %v490_v43, %v486_v15  ;;  %v1816_v15 = vrot.slane %v332_v44, %v1770_v31  ;;  %v1836_v44 = vrot.slane %v333_v55, %v1770_v31 }
 0x1a4   : > { %v511_v47 = vmul.f32 %v504_v36, %v498_v49  ;;  %v512_v50 = vmul.f32 %v508_v37, %v496_v48 }
 0x1a6   : > { %v525_v56 = vmul.f32 %v1716_v59, %v511_v47  ;;  %v526_v57 = vmul.f32 %v1716_v59, %v512_v50  ;;  %v492_v58 = vpop.permute.xlu1 %491  ;;  %v538_v60 = vpop.permute.xlu0 %537  ;;  %v1839_v47 = vrot.slane %v333_v55, %v1772_v32  ;;  %v1854_v55 = vrot.slane %v335_v45, %v1772_v32 }
 0x1a7   : > { %v497_v33 = vsel %vm495_vm1, %v488_v16, %v492_v58  ;;  %v499_v38 = vsel %vm495_vm1, %v492_v58, %v488_v16  ;;  %v542_v59 = vsel %vm541_vm2, %v534_v17, %v538_v60  ;;  %v544_v43 = vsel %vm541_vm2, %v538_v60, %v534_v17 }
 0x1a8   : > { %v513_v48 = vmul.f32 %v504_v36, %v499_v38  ;;  %v514_v49 = vmul.f32 %v508_v37, %v497_v33  ;;  %v557_v50 = vmul.f32 %v550_v51, %v544_v43  ;;  %v558_v16 = vmul.f32 %v554_v52, %v542_v59 }
 0x1a9   : > { %v1843_v58 = vrot.slane %v334_v27, %v1770_v31  ;;  %v1846_v17 = vrot.slane %v334_v27, %v1772_v32  ;;  %v1851_v38 = vrot.slane %v335_v45, %v1770_v31  ;;  %v529_v59 = vadd.f32 %v525_v56, %v481_v39 }
 0x1aa   : > { %v527_v60 = vmul.f32 %v1718_v61, %v513_v48  ;;  %v528_v36 = vmul.f32 %v1718_v61, %v514_v49  ;;  %v540_v37 = vpop.permute.xlu1 %539  ;;  %v584_v33 = vpop.permute.xlu0 %583  ;;  %v530_v43 = vadd.f32 %v526_v57, %v482_v40  ;;  %v571_v61 = vmul.f32 %v1720_v62, %v557_v50 }
 0x1ab   : > { %v543_v0 = vsel %vm541_vm2, %v1748_v18, %v540_v37  ;;  %v545_v27 = vsel %vm541_vm2, %v540_v37, %v1748_v18  ;;  %v572_v48 = vmul.f32 %v1720_v62, %v558_v16  ;;  %v588_v39 = vsel %vm587_vm3, %v1750_v19, %v584_v33 }
 0x1ac   : > { %v559_v49 = vmul.f32 %v550_v51, %v545_v27  ;;  %v560_v7 = vmul.f32 %v554_v52, %v543_v0  ;;  %v531_v45 = vadd.f32 %v527_v60, %v483_v41  ;;  %v532_v8 = vadd.f32 %v528_v36, %v484_v46 }
 0x1ad   : > { %v590_v40 = vsel %vm587_vm3, %v584_v33, %v1750_v19  ;;  %v604_v62 = vmul.f32 %v600_v54, %v588_v39  ;;  %v576_v52 = vadd.f32 %v572_v48, %v530_v43 }
 0x1ae   : > { %v573_v18 = vmul.f32 %v1722_v63, %v559_v49  ;;  %v574_v56 = vmul.f32 %v1722_v63, %v560_v7  ;;  %v603_v57 = vmul.f32 %v596_v53, %v590_v40  ;;  %v586_v51 = vpop.permute.xlu1 %585  ;;  %v630_v0 = vpop.permute.xlu0 %629  ;;  %v575_v63 = vadd.f32 %v571_v61, %v529_v59 }
 0x1af   : > { %v589_v41 = vsel %vm587_vm3, %v1752_v20, %v586_v51  ;;  %v591_v46 = vsel %vm587_vm3, %v586_v51, %v1752_v20  ;;  %v634_v19 = vsel %vm633_vm4, %v1754_v21, %v630_v0  ;;  %v636_v7 = vsel %vm633_vm4, %v630_v0, %v1754_v21 }
 0x1b0   : > { %v617_v50 = vmul.f32 %v1724_v1, %v603_v57  ;;  %v618_v16 = vmul.f32 %v1724_v1, %v604_v62  ;;  %v605_v60 = vmul.f32 %v596_v53, %v591_v46  ;;  %v606_v36 = vmul.f32 %v600_v54, %v589_v41  ;;  %v336_v46 = vld [vmem:[%s2075_s3 + $0x10] sm:$0x3] }
 0x1b1   : > { %v649_v37 = vmul.f32 %v1816_v15, %v636_v7  ;;  %v650_v20 = vmul.f32 %v1819_v24, %v634_v19  ;;  %v577_v33 = vadd.f32 %v573_v18, %v531_v45  ;;  %v578_v27 = vadd.f32 %v574_v56, %v532_v8 }
 0x1b2   : > { %v621_v49 = vadd.f32 %v617_v50, %v575_v63  ;;  %v622_v39 = vadd.f32 %v618_v16, %v576_v52  ;;  %v632_v40 = vpop.permute.xlu1 %631  ;;  %v676_v21 = vpop.permute.xlu0 %675  ;;  %v619_v59 = vmul.f32 %v1726_v2, %v605_v60  ;;  %v620_v43 = vmul.f32 %v1726_v2, %v606_v36 }
 0x1b3   : > { %v663_v1 = vmul.f32 %v1728_v3, %v649_v37  ;;  %v664_v53 = vmul.f32 %v1728_v3, %v650_v20  ;;  %v635_v54 = vsel %vm633_vm4, %v1756_v22, %v632_v40  ;;  %v637_v8 = vsel %vm633_vm4, %v632_v40, %v1756_v22 }
 0x1b4   : > { %v680_v61 = vsel %vm679_vm5, %v1758_v23, %v676_v21  ;;  %v682_v2 = vsel %vm679_vm5, %v676_v21, %v1758_v23  ;;  %v623_v48 = vadd.f32 %v619_v59, %v577_v33  ;;  %v624_v3 = vadd.f32 %v620_v43, %v578_v27 }
 0x1b5   : > { %v667_v45 = vadd.f32 %v663_v1, %v621_v49  ;;  %v668_v18 = vadd.f32 %v664_v53, %v622_v39  ;;  %v651_v56 = vmul.f32 %v1816_v15, %v637_v8  ;;  %v652_v57 = vmul.f32 %v1819_v24, %v635_v54 }
 0x1b6   : > { %v695_v22 = vmul.f32 %v1836_v44, %v680_v61  ;;  %v696_v62 = vmul.f32 %v1839_v47, %v682_v2  ;;  %v678_v51 = vpop.permute.xlu1 %677  ;;  %v722_v0 = vpop.permute.xlu0 %721  ;;  %v826_v33 = vrot.slane %v336_v46, %v1770_v31 }
 0x1b7   : > { %v681_v23 = vsel %vm679_vm5, %v1760_v25, %v678_v51  ;;  %v683_v41 = vsel %vm679_vm5, %v678_v51, %v1760_v25  ;;  %v726_v15 = vsel %vm725_vm6, %v1762_v26, %v722_v0  ;;  %v728_v24 = vsel %vm725_vm6, %v722_v0, %v1762_v26 }
 0x1b8   : > { %v665_v19 = vmul.f32 %v1730_v4, %v651_v56  ;;  %v666_v7 = vmul.f32 %v1730_v4, %v652_v57  ;;  %v709_v63 = vmul.f32 %v1732_v5, %v695_v22  ;;  %v710_v25 = vmul.f32 %v1732_v5, %v696_v62 }
 0x1b9   : > { %v697_v52 = vmul.f32 %v1836_v44, %v681_v23  ;;  %v698_v50 = vmul.f32 %v1839_v47, %v683_v41  ;;  %v741_v16 = vmul.f32 %v1843_v58, %v726_v15  ;;  %v742_v26 = vmul.f32 %v1846_v17, %v728_v24 }
 0x1ba   : > { %v669_v60 = vadd.f32 %v665_v19, %v623_v48  ;;  %v670_v36 = vadd.f32 %v666_v7, %v624_v3  ;;  %v724_v37 = vpop.permute.xlu1 %723  ;;  %v768_v20 = vpop.permute.xlu0 %767  ;;  %v830_v4 = vrot.slane %v336_v46, %v1772_v32  ;;  %v713_v27 = vadd.f32 %v709_v63, %v667_v45 }
 0x1bb   : > { %v714_v49 = vadd.f32 %v710_v25, %v668_v18  ;;  %v755_v5 = vmul.f32 %v1736_v9, %v741_v16  ;;  %v756_v44 = vmul.f32 %v1736_v9, %v742_v26  ;;  %v727_v47 = vsel %vm725_vm6, %v1764_v28, %v724_v37 }
 0x1bc   : > { %v729_v39 = vsel %vm725_vm6, %v724_v37, %v1764_v28  ;;  %v772_v31 = vsel %vm771_vm7, %v1766_v29, %v768_v20  ;;  %v774_v32 = vsel %vm771_vm7, %v768_v20, %v1766_v29  ;;  %v711_v40 = vmul.f32 %v1734_v6, %v697_v52 }
 0x1bd   : > { %v712_v9 = vmul.f32 %v1734_v6, %v698_v50  ;;  %v759_v21 = vadd.f32 %v755_v5, %v713_v27  ;;  %v760_v59 = vadd.f32 %v756_v44, %v714_v49  ;;  %v743_v43 = vmul.f32 %v1843_v58, %v727_v47 }
 0x1be   : > { %v744_v1 = vmul.f32 %v1846_v17, %v729_v39  ;;  %v787_v28 = vmul.f32 %v1851_v38, %v772_v31  ;;  %v788_v53 = vmul.f32 %v1854_v55, %v774_v32  ;;  %v770_v54 = vpop.permute.xlu1 %769  ;;  %v814_v8 = vpop.permute.xlu0 %813  ;;  %v715_v57 = vadd.f32 %v711_v40, %v669_v60 }
 0x1bf   : > { %v773_v29 = vsel %vm771_vm7, %v1777_v34, %v770_v54  ;;  %v775_v6 = vsel %vm771_vm7, %v770_v54, %v1777_v34  ;;  %v818_v58 = vsel %vm817_vm8, %v1779_v35, %v814_v8  ;;  %v820_v17 = vsel %vm817_vm8, %v814_v8, %v1779_v35 }
 0x1c0   : > { %v757_v61 = vmul.f32 %v1738_v10, %v743_v43  ;;  %v758_v2 = vmul.f32 %v1738_v10, %v744_v1  ;;  %v801_v48 = vmul.f32 %v1740_v11, %v787_v28  ;;  %v802_v3 = vmul.f32 %v1740_v11, %v788_v53 }
 0x1c1   : > { %v789_v45 = vmul.f32 %v1851_v38, %v773_v29  ;;  %v790_v34 = vmul.f32 %v1854_v55, %v775_v6  ;;  %v833_v18 = vmul.f32 %v826_v33, %v818_v58  ;;  %v834_v56 = vmul.f32 %v830_v4, %v820_v17 }
 0x1c2   : > { %v716_v22 = vadd.f32 %v712_v9, %v670_v36  ;;  %v816_v62 = vpop.permute.xlu1 %815  ;;  %v806_v51 = vadd.f32 %v802_v3, %v760_v59  ;;  %v805_v0 = vadd.f32 %v801_v48, %v759_v21  ;;  %v761_v11 = vadd.f32 %v757_v61, %v715_v57  ;;  %v337_v48 = vld [vmem:[%s2076_s4] sm:$0xff] }
 0x1c3   : > { %v803_v35 = vmul.f32 %v1742_v12, %v789_v45  ;;  %v804_v23 = vmul.f32 %v1742_v12, %v790_v34  ;;  %v847_v10 = vmul.f32 %v1744_v13, %v833_v18  ;;  %v848_v41 = vmul.f32 %v1744_v13, %v834_v56  ;;  %v338_v3 = vld [vmem:[%s2077_s5] sm:$0xff]  ;;  %v347_v45 = vld [vmem:[%s2079_s7 + $0x30] sm:$0xff] }
 0x1c4   : > { %v762_v15 = vadd.f32 %v758_v2, %v716_v22  ;;  %v819_v38 = vsel %vm817_vm8, %v1790_v42, %v816_v62  ;;  %v821_v55 = vsel %vm817_vm8, %v816_v62, %v1790_v42  ;;  %v1477_v8 = vmov 0.0|0.0  }
 0x1c5   : > { %v835_v24 = vmul.f32 %v826_v33, %v819_v38  ;;  %v836_v46 = vmul.f32 %v830_v4, %v821_v55  ;;  %v852_v19 = vadd.f32 %v848_v41, %v806_v51  ;;  %v851_v7 = vadd.f32 %v847_v10, %v805_v0  ;;  %1299 = vmatprep.subr.bf16.mxu1 %v1477_v8  ;;  %v345_v10 = vld [vmem:[%s2079_s7 + $0x20] sm:$0xff] }
 0x1c6   : > { %v808_v25 = vadd.f32 %v804_v23, %v762_v15  ;;  %v807_v13 = vadd.f32 %v803_v35, %v761_v11  ;;  %v2088_v29 = vmov 0.0   ;;  %v339_v35 = vld [vmem:[%s2077_s5 + $0x8] sm:$0xff] }
 0x1c7   : > { %v849_v12 = vmul.f32 %v1746_v14, %v835_v24  ;;  %v850_v63 = vmul.f32 %v1746_v14, %v836_v46  ;;  %1291 = vmatprep.mubr.msk.f32.mxu1 %vm1478_vm9, %v2088_v29  ;;  %v346_v23 = vld [vmem:[%s2079_s7 + $0x28] sm:$0xff] }
 0x1c9   : > { %v854_v52 = vadd.f32 %v850_v63, %v808_v25  ;;  %v853_v50 = vadd.f32 %v849_v12, %v807_v13  ;;  %v348_v13 = vld [vmem:[%s2079_s7 + $0x38] sm:$0xff] }
 0x1cf   : > { %v858_v16 = vpop.permute.xlu0 %857 }
 0x1d0   : > { %v865_v26 = vadd.f32 %v858_v16, %v851_v7  ;;  %v866_v60 = vadd.f32 %v858_v16, %v852_v19 }
 0x1d2   : > { %v1264_v36 = vmul.f32 -1.442695, %v865_v26  ;;  %v1265_v37 = vmul.f32 -1.442695, %v866_v60 }
 0x1d3   : > { %v863_v20 = vpop.permute.xlu1 %862 }
 0x1d4   : > { %1375 = vpow2.f32 %v1264_v36  ;;  %v867_v30 = vadd.f32 %v863_v20, %v853_v50  ;;  %v868_v42 = vadd.f32 %v863_v20, %v854_v52 }
 0x1d5   : > { %1377 = vpow2.f32 %v1265_v37 }
 0x1d6   : > { %v1266_v33 = vmul.f32 -1.442695, %v867_v30  ;;  %v1267_v4 = vmul.f32 -1.442695, %v868_v42 }
 0x1d8   : > { %1379 = vpow2.f32 %v1266_v33 }
 0x1d9   : > { %1381 = vpow2.f32 %v1267_v4 }
 0x1de   : > { %v1376_v27 = vpop.eup %1375 }
 0x1df   : > { %v1378_v14 = vpop.eup %1377  ;;  %v881_v49 = vadd.f32 1.0, %v1376_v27 }
 0x1e0   : > { %v882_v5 = vadd.f32 1.0, %v1378_v14 }
 0x1e1   : > { %1383 = vrcp.f32 %v881_v49  ;;  %v2089_v49 = vld [vmem:[#allocation6_spill] sm:$0xff] }
 0x1e2   : > { %v1380_v44 = vpop.eup %1379  ;;  %1385 = vrcp.f32 %v882_v5 }
 0x1e3   : > { %v1382_v47 = vpop.eup %1381  ;;  %v883_v39 = vadd.f32 1.0, %v1380_v44  ;;  %v2090_v44 = vld [vmem:[#allocation5_spill] sm:$0xff] }
 0x1e4   : > { %v884_v31 = vadd.f32 1.0, %v1382_v47 }
 0x1e5   : > { %1387 = vrcp.f32 %v883_v39 }
 0x1e6   : > { %1389 = vrcp.f32 %v884_v31 }
 0x1eb   : > { %v1384_v32 = vpop.eup %1383 }
 0x1ec   : > { %v1386_v40 = vpop.eup %1385  ;;  %v1986_v9 = vmul.f32 %v1384_v32, %v865_v26 }
 0x1ed   : > { %v1988_v21 = vmul.f32 %v1386_v40, %v866_v60 }
 0x1ef   : > { %v1388_v59 = vpop.eup %1387  ;;  %v897_v43 = vadd.f32 %v1988_v21, %v1986_v9 }
 0x1f0   : > { %v1390_v1 = vpop.eup %1389  ;;  %v895_v28 = vmul.f32 %v1388_v59, %v867_v30  ;;  %v340_v30 = vld [vmem:[%s2078_s6] sm:$0xff] }
 0x1f1   : > { %898 = vadd.xlane.f32.xlu0 %v897_v43  ;;  %v896_v53 = vmul.f32 %v1390_v1, %v868_v42 }
 0x1f3   : > { %v900_v54 = vadd.f32 %v896_v53, %v895_v28 }
 0x1f5   : > { %901 = vadd.xlane.f32.xlu1 %v900_v54 }
 0x27e   : > { %v899_v6 = vpop.xlane.xlu0 %898 }
 0x27f   : > { %v904_v17 = vmul.f32 0.00390625, %v899_v6 }
 0x282   : > { %v902_v58 = vpop.xlane.xlu1 %901 }
 0x283   : > { %v905_v61 = vmul.f32 0.00390625, %v902_v58 }
 0x285   : > { %v1300_v2 = vpack.c.bf16 %v905_v61, %v904_v17 }
 0x287   : > { %1301 = vmatpush3.bf16.msra.mxu1 %v1300_v2 }
 0x28a   : > { %1292 = vmatmul.mubr.msk.f32.vlgmr.msra.gmra.mrb[0].mxu1 %vm906_vm10, %v337_v48 }
 0x28b   : > { %1296 = vmatprep.mubr.msk.f32.mxu1 %vm359_vm0, %v338_v3 }
 0x35d   : > { %v976_v34 = vpop.f32.mrb[0].mxu1 }
 0x35e   : > { %v977_v18 = vadd.f32 %v976_v34, %v347_v45  ;;  %v1293_v56 = vpop.f32.mrb[1].mxu1 }
 0x360   : > { %v1269_v57 = vmul.f32 -1.442695, %v977_v18 }
 0x362   : > { %1391 = vpow2.f32 %v1269_v57 }
 0x36c   : > { %v1392_v22 = vpop.eup %1391 }
 0x36d   : > { %v983_v62 = vadd.f32 1.0, %v1392_v22 }
 0x36f   : > { %1393 = vrcp.f32 %v983_v62 }
 0x379   : > { %v1394_v51 = vpop.eup %1393 }
 0x37a   : > { %v986_v0 = vmul.f32 %v1394_v51, %v977_v18 }
 0x37c   : > { %1294 = vmatprep.subr.mxu1 %v986_v0 }
 0x37d   : > { %1295 = vmatpush3.msra.mxu1 %v986_v0 }
 0x37e   : > { %1297 = vmatmul.mubr.msk.f32.vlgmr.msra.gmra.mrb[2].mxu1 %vm359_vm0, %v339_v35 }
 0x451   : > { %v1298_v41 = vpop.f32.mrb[2].mxu1 }
 0x452   : > { %v1065_v11 = vadd.f32 %v1298_v41, %v346_v23  ;;  %v1059_v15 = vpop.f32.mrb[3].mxu1 }
 0x453   : > { %v1060_v38 = vadd.f32 %v1059_v15, %v345_v10 }
 0x454   : > { %v1273_v55 = vmul.f32 -1.442695, %v1065_v11 }
 0x455   : > { %v1272_v24 = vmul.f32 -1.442695, %v1060_v38 }
 0x456   : > { %1395 = vpow2.f32 %v1273_v55 }
 0x457   : > { %1397 = vpow2.f32 %v1272_v24 }
 0x460   : > { %v1396_v46 = vpop.eup %1395 }
 0x461   : > { %v1398_v19 = vpop.eup %1397  ;;  %v1075_v7 = vadd.f32 1.0, %v1396_v46 }
 0x462   : > { %v1074_v12 = vadd.f32 1.0, %v1398_v19 }
 0x463   : > { %1399 = vrcp.f32 %v1075_v7 }
 0x464   : > { %1401 = vrcp.f32 %v1074_v12 }
 0x46d   : > { %v1400_v63 = vpop.eup %1399 }
 0x46e   : > { %v1402_v25 = vpop.eup %1401  ;;  %1087 = vperm.xlu1 %1358, %v1400_v63  }
 0x46f   : > { %1082 = vperm.xlu0 %1357, %v1402_v25  }
 0x473   : > { %1096 = vperm.xlu0 %1357, %v348_v13  }
 0x4ed   : > { %v1088_v52 = vpop.permute.xlu1 %1087 }
 0x4ee   : > { %v1092_v50 = vmul.f32 %v1088_v52, %v895_v28  ;;  %v1093_v16 = vmul.f32 %v1088_v52, %v896_v53  ;;  %v1083_v26 = vpop.permute.xlu0 %1082 }
 0x4ef   : > { %v1090_v60 = vmul.f32 %v1083_v26, %v1986_v9  ;;  %v1091_v36 = vmul.f32 %v1083_v26, %v1988_v21 }
 0x4f1   : > { %v1302_v37 = vpack.c.bf16 %v1093_v16, %v1091_v36  ;;  %v1304_v20 = vpack.c.bf16 %v1092_v50, %v1090_v60 }
 0x4f2   : > { %v1097_v42 = vpop.permute.xlu0 %1096 }
 0x4f3   : > { %1303 = vmatprep.subr.bf16.mxu0 %v1302_v37 }
 0x4f4   : > { %1305 = vmatpush1.bf16.msra.mxu0 %v1304_v20 }
 0x4f7   : > { %1274 = vmatmul.mubr.msk.f32.vlgmr.msra.gmra.mrb[4].mxu0 %vm906_vm10, %v340_v30 }
 0x5ca   : > { %v1168_v33 = vpop.f32.mrb[4].mxu0 }
 0x5cb   : > { %v1169_v4 = vadd.f32 %v1168_v33, %v1097_v42  ;;  %v1170_v27 = vpop.f32.mrb[5].mxu0 }
 0x5cc   : > { %v1171_v14 = vadd.f32 %v1170_v27, %v1097_v42 }
 0x5cd   : > { %v1173_v5 = vadd.f32 %v1169_v4, %v2089_v49 }
 0x5ce   : > { %v1174_v47 = vadd.f32 %v1171_v14, %v2090_v44 }
 0x5cf   : > { %1175 = vst [vmem:[%s299_s22] sm:$0xff] %v1173_v5 }
 0x5d0   : > { %1176 = vst [vmem:[%s299_s22 + $0x8] sm:$0xff] %v1174_v47 }
 0x5d1   : > { %1416 = shalt.err (!%p1413_p3)
}
 0x5d2   : > { %s1417_s19 = scalar_lea.hbm %s2030_s26, 256  ;;  %s1421_s21 = scalar_lea.hbm %s2080_s8, 512 }
 0x5d3   : > { %p1418_p4 = scmp.ne.s32.totalorder %s2030_s26, %s1417_s19  ;;  %p1422_p9 = scmp.lt.u32.totalorder %s2030_s26, %s2080_s8 }
 0x5d4   : > { %p1423_p10 = scmp.lt.u32.totalorder %s1421_s21, %s1417_s19  ;;  %p1425_p12 = scmp.lt.u32.totalorder %s1417_s19, %s2030_s26 }
 0x5d5   : > { %p1419_p7 = pnand %p1418_p4, %p1563_p5 }
 0x5d6   : > { %p1424_p11 = por %p1423_p10, %p1422_p9 }
 0x5d7   : > { %p1420_p8 = pneg %p1419_p7 }
 0x5d8   : > { %p1426_p13 = por %p1425_p12, %p1424_p11 }
 0x5da   : > { %p1427_p0 = pnand %p1426_p13, %p1420_p8 }
 0x5dc   : > { %1430 = shalt.err (!%p1427_p0)
}
 0x5dd   : > { %1306 = dma.vmem_to_hbm [thread:$0]  (%p1563_p5), %s2032_s23, 256, %s2030_s26, %s1178_s9  }
 0x5de PF: > { %p1312_p1 = scmp.ge.s32.totalorder %s1465_s30, 2  ;;  %s1204_s25 = sand.u32 1, %s1453_s27  }
 0x5df   : > { %s1205_s10 = scalar_lea.sflag [#allocation3], %s1204_s25 }
 0x5e0   : > { %p1309_p2 = pnand %p1312_p1, %p1567_p6 }
 0x5e2   : > { %1448 = dma.done.wait (!%p1309_p2), %s1205_s10, 256  }
 0x5e3   : > { %1450 = vsyncadd (!%p1309_p2), %s1205_s10, 4294967040  ;;  %p18_p3 = scmp.ge.s32.totalorder %s1550_s11, 4   ;;  %s2091_s27 = smov %s1457_s28 }
 0x5e4   : > { %s2092_s28 = smov %s1461_s29  ;;  %s2093_s29 = smov %s1561_s14 }
 0x5e5   : > { %s2094_s30 = smov %s1550_s11  ;;  %20 = sbr.rel (!%p18_p3) target bundleno = 3 (0x3), region = 87 }
 0x5ec   :  { %1210 = vsyncpa [#allocation3], 1 }
 0x5ed   :  { %1212 = vsyncpa [#allocation3 + $0x1], 1 }

</bundles_post_ra>
